<compile_context>
chip_gen: v6e
topology: v6e:2x2x1
jax: 0.10.0
libtpu: 0.0.40
codegen_flags: <defaults>
</compile_context>

<pallas_src>
import jax
import jax.numpy as jnp
from jax.experimental import pallas as pl
from jax.experimental.pallas import tpu as pltpu


# ----------------------------------------------------------------------------
# Kernel: single HBM -> HBM DMA (pure copy, no VMEM round-trip)
# ----------------------------------------------------------------------------
def _hbm_copy_kernel(x_hbm, o_hbm, sem):
    cp = pltpu.make_async_copy(x_hbm, o_hbm, sem)
    cp.start()
    cp.wait()


# ----------------------------------------------------------------------------
# Optional materialized-copy path (only used when a distinct buffer is needed)
# ----------------------------------------------------------------------------
def _pallas_identity_copy(x):
    nbytes = int(x.size) * x.dtype.itemsize
    return pl.pallas_call(
        _hbm_copy_kernel,
        out_shape=jax.ShapeDtypeStruct(x.shape, x.dtype),
        in_specs=[pl.BlockSpec(memory_space=pl.ANY)],
        out_specs=pl.BlockSpec(memory_space=pl.ANY),
        scratch_shapes=[pltpu.SemaphoreType.DMA(())],
        cost_estimate=pl.CostEstimate(
            flops=0, transcendentals=0, bytes_accessed=2 * nbytes
        ),
    )(x)


# ----------------------------------------------------------------------------
# Module wrapper
# ----------------------------------------------------------------------------
class IdentityQuantizer:
    def __init__(self, input_size: int = 512, **kwargs):
        self.code_dim = input_size
        self.input_size = input_size
        # `zero` buffer: plain cached constant (no kernel launch needed).
        self.zero = jnp.zeros((1,), jnp.float32)

    def output_size(self):
        return self.code_dim

    def __call__(self, x, materialize_copy: bool = False):
        # Reference forward is a pure pass-through: (x, None, zero).
        # Fast path (default) returns x directly — matches PyTorch returning
        # the same tensor object and avoids a full HBM read+write of x.
        if materialize_copy:
            y = _pallas_identity_copy(x)
        else:
            y = x
        return y, None, self.zero


# ----------------------------------------------------------------------------
# Demo
# ----------------------------------------------------------------------------
if __name__ == "__main__":
    key = jax.random.PRNGKey(0)
    B, T, D = 2, 8, 32  # small (batch, seq, hidden) shapes
    x = jax.random.normal(key, (B, T, D), dtype=jnp.float32)

    quantizer = IdentityQuantizer(input_size=D)

    # Default (optimized) path: pure pass-through, no kernel launch.
    y, none_out, zero = quantizer(x)
    jax.block_until_ready(y)
    jax.block_until_ready(zero)
    assert none_out is None
    assert y.shape == x.shape and y.dtype == x.dtype
    assert bool(jnp.all(y == x))
    assert zero.shape == (1,) and float(zero[0]) == 0.0

    # Explicit distinct-buffer path: exercises the Pallas HBM->HBM DMA kernel.
    y_copy, none_out2, zero2 = quantizer(x, materialize_copy=True)
    jax.block_until_ready(y_copy)
    assert none_out2 is None
    assert y_copy.shape == x.shape and y_copy.dtype == x.dtype
    assert bool(jnp.all(y_copy == x))
    assert float(zero2[0]) == 0.0

    print("KERNEL_OK")
</pallas_src>

<mosaic_0001>
module attributes {stable_mosaic.version = 11 : i64} {
  func.func @_hbm_copy_kernel(%arg0: memref<2x8x32xf32, #tpu.memory_space<any>>, %arg1: memref<2x8x32xf32, #tpu.memory_space<any>>, %arg2: memref<!tpu.dma_semaphore, #tpu.memory_space<semaphore_mem>>) attributes {dimension_semantics = [], scalar_prefetch = 0 : i64, scratch_operands = 1 : i64, tpu.core_type = #tpu.core_type<tc>} {
    tpu.enqueue_dma source(%arg0 : memref<2x8x32xf32, #tpu.memory_space<any>>) target(%arg1 : memref<2x8x32xf32, #tpu.memory_space<any>>) target_semaphore(%arg2 : memref<!tpu.dma_semaphore, #tpu.memory_space<semaphore_mem>>)
    tpu.wait_dma2 semaphore(%arg2 : memref<!tpu.dma_semaphore, #tpu.memory_space<semaphore_mem>>) src(%arg0 : memref<2x8x32xf32, #tpu.memory_space<any>>) dst(%arg1 : memref<2x8x32xf32, #tpu.memory_space<any>>)
    return
  }
}

</mosaic_0001>

<bundles_post_ra>
// kernel: tpu_custom_call.1
= control target key start
LH: loop header
LB: loop body
LE: loop exit
PB: predicated region body
PF: predicated region fallthrough
CT: control target
= control target key end

     0   :  { %s29_s6 = smov [#allocation2]   ;;  %s30_s7 = smov 131072   ;;  %s48_s0 = inlined_call_operand.hbm [shape: f32[2,8,32], index: 0, kind: input, shape index: {}]   ;;  %s49_s1 = inlined_call_operand.hbm [shape: f32[2,8,32], index: 1, kind: output, shape index: {}]  }
   0x1   :  { %s31_s8 = smov 0  }
   0x2   :  { %12 = dma.general %s48_s0, 256, %s49_s1, %s29_s6, %s30_s7, [#allocation4], %s31_s8, 0  }
   0x3   :  { %27 = dma.done.wait [#allocation2], 256 }
   0x4   :  { %28 = vsyncadd [#allocation2], 4294967040 }
   0x5   :  { %17 = vsyncmov [#allocation2] }
   0x8   :  { %s18_s13 = vpop.sfrf %17 }
   0x9   :  { %p23_p0 = scmp.ne.s32.totalorder %s18_s13, 0 }
   0xb   :  { %22 = shalt.err (%p23_p0)  }

</bundles_post_ra>
